<compile_context>
chip_gen: v6e
topology: v6e:2x2x1
jax: 0.10.0
libtpu: 0.0.40
codegen_flags: <defaults>
</compile_context>

<pallas_src>
import functools

import jax
import jax.numpy as jnp
from jax import lax
from jax.experimental import pallas as pl
from jax.experimental.pallas import tpu as pltpu


# ~16 vregs of f32 per streamed chunk; keeps chunk + hoisted gate well inside
# the 256 KiB vreg file so the streamed loops never spill.
_VREG_CHUNK_BYTES = 64 * 1024


def _round_down_128(v: int) -> int:
    return (v // 128) * 128


def _vmem_plan():
    """Generation-aware VMEM sizing.

    Returns (block_budget, vmem_limit): block_budget is the total budget for
    the double-buffered x-in + out blocks (i.e. per-block budget = budget/4).
    """
    cap = None
    try:
        cap = getattr(pltpu.get_tpu_info(), "vmem_capacity_bytes", None)
    except Exception:
        cap = None
    if cap is not None and cap >= 100 * 1024 * 1024:
        # v5e / v6e: 128 MiB physical VMEM -> ~12 MiB per buffered block.
        return 48 * 1024 * 1024, 64 * 1024 * 1024
    # v7x (64 MiB physical) or unknown: stay conservative.
    return 32 * 1024 * 1024, 48 * 1024 * 1024


def _plan_fast_chunks(hw: int, nb: int, c: int):
    """Streamed chunk along H*W for the fused kernel: (chunk, n_full, tail).

    Chunk is sized from the f32 per-iteration working set (nb*C*chunk*4 bytes),
    preferring a 128-multiple that divides H*W (no tail); otherwise the largest
    128-multiple under the cap plus one explicit tail iteration.
    """
    cap = max(128, _round_down_128(_VREG_CHUNK_BYTES // max(1, nb * c * 4)))
    if hw <= cap:
        return hw, 1, 0
    chunk = cap
    cand = cap
    while cand >= 128:
        if hw % cand == 0:
            chunk = cand
            break
        cand -= 128
    return chunk, hw // chunk, hw % chunk


# --------------------------------------------------------------------------
# Fused fast-path kernel: pool + SE-MLP + gated multiply in one grid step.
# --------------------------------------------------------------------------
def ca_layer_kernel(x_ref, w1t_ref, b1_ref, w2t_ref, b2_ref, o_ref, *,
                    hw_chunk, n_full, tail, inv_hw, unroll):
    # x_ref/o_ref: (nb, C, HW); w1t: (C, Cr); b1: (1, Cr); w2t: (Cr, C); b2: (1, C)
    nb, c, hw = x_ref.shape

    # ---- Pass 1: streamed global average pool (f32 accumulation) ----------
    def pool_body(i, acc):
        start = pl.multiple_of(i * hw_chunk, hw_chunk)
        chunk = x_ref[:, :, pl.ds(start, hw_chunk)].astype(jnp.float32)
        return acc + jnp.sum(chunk, axis=-1)           # lane-reduce -> (nb, C)

    pooled = lax.fori_loop(0, n_full, pool_body,
                           jnp.zeros((nb, c), jnp.float32), unroll=unroll)
    if tail:
        tail_chunk = x_ref[:, :, hw - tail:].astype(jnp.float32)
        pooled = pooled + jnp.sum(tail_chunk, axis=-1)
    pooled = pooled * jnp.float32(inv_hw)               # mean on (nb, C) only

    # ---- Squeeze-excite MLP (1x1 convs == dense layers over channels) ------
    h = jnp.dot(pooled, w1t_ref[...], preferred_element_type=jnp.float32)
    h = jnp.maximum(h + b1_ref[...], 0.0)                           # ReLU
    s = jnp.dot(h, w2t_ref[...], preferred_element_type=jnp.float32) + b2_ref[...]
    gate = jax.nn.sigmoid(s).astype(o_ref.dtype)                    # (nb, C)

    # Hoisted lane-broadcast (JAX does not CSE broadcast_in_dim in the loop);
    # sized to the same vreg budget as the streamed chunk.
    gate_b = jnp.broadcast_to(gate[:, :, None], (nb, c, hw_chunk))

    # ---- Pass 2: streamed gated multiply in the *input* dtype --------------
    def mul_body(i, carry):
        start = pl.multiple_of(i * hw_chunk, hw_chunk)
        sl = pl.ds(start, hw_chunk)
        o_ref[:, :, sl] = x_ref[:, :, sl] * gate_b
        return carry

    lax.fori_loop(0, n_full, mul_body, jnp.int32(0), unroll=unroll)
    if tail:
        o_ref[:, :, hw - tail:] = x_ref[:, :, hw - tail:] * gate[:, :, None]


# --------------------------------------------------------------------------
# Split-path kernels (spatially tiled): pooled-sum pass + gated-multiply pass.
# --------------------------------------------------------------------------
def ca_pool_kernel(x_ref, o_ref, *, hw_chunk, n_chunks, hw_tile, hw_total, unroll):
    # x_ref: (1, C, hw_tile); o_ref: (1, C, 1) f32, resident across the hw grid axis.
    h = pl.program_id(1)

    @pl.when(h == 0)
    def _():
        o_ref[...] = jnp.zeros_like(o_ref)

    valid = hw_total - h * hw_tile            # in-bounds lanes of this block
    nb, c, _ = x_ref.shape

    def body(i, acc):
        start = pl.multiple_of(i * hw_chunk, hw_chunk)
        chunk = x_ref[:, :, pl.ds(start, hw_chunk)].astype(jnp.float32)
        lane = lax.broadcasted_iota(jnp.int32, chunk.shape, 2) + start
        chunk = jnp.where(lane < valid, chunk, 0.0)    # mask padded tail lanes
        return acc + jnp.sum(chunk, axis=-1, keepdims=True)

    o_ref[...] += lax.fori_loop(0, n_chunks, body,
                                jnp.zeros((nb, c, 1), jnp.float32), unroll=unroll)


def ca_gate_mul_kernel(x_ref, g_ref, o_ref, *, hw_chunk, n_chunks, unroll):
    # x_ref/o_ref: (1, C, hw_tile); g_ref: (1, C, 1) in the output dtype.
    nb, c, _ = x_ref.shape
    gate_b = jnp.broadcast_to(g_ref[...], (nb, c, hw_chunk))

    def body(i, carry):
        start = pl.multiple_of(i * hw_chunk, hw_chunk)
        sl = pl.ds(start, hw_chunk)
        o_ref[:, :, sl] = x_ref[:, :, sl] * gate_b     # OOB tail writes discarded
        return carry

    lax.fori_loop(0, n_chunks, body, jnp.int32(0), unroll=unroll)


def _ca_layer_split(x3, w1t, b1_2d, w2t, b2_2d, per_block_budget, vmem_limit):
    """Spatially tiled path for oversized samples / tiny batches."""
    N, C, HW = x3.shape
    itemsize = x3.dtype.itemsize

    hw_chunk = max(128, _round_down_128(_VREG_CHUNK_BYTES // max(1, C * 4)))
    if HW <= hw_chunk:
        hw_chunk = HW
        n_chunks = 1
    else:
        chunk_bytes = max(1, C * hw_chunk * itemsize)
        n_chunks = max(1, min(per_block_budget // chunk_bytes,
                              pl.cdiv(HW, hw_chunk)))
    hw_tile = hw_chunk * n_chunks
    grid_hw = pl.cdiv(HW, hw_tile)
    unroll = n_chunks <= 8

    # Pass 1: spatially tiled pooled sum -> (N, C, 1) f32.
    pooled = pl.pallas_call(
        functools.partial(ca_pool_kernel, hw_chunk=hw_chunk, n_chunks=n_chunks,
                          hw_tile=hw_tile, hw_total=HW, unroll=unroll),
        out_shape=jax.ShapeDtypeStruct((N, C, 1), jnp.float32),
        grid_spec=pltpu.PrefetchScalarGridSpec(
            num_scalar_prefetch=0,
            grid=(N, grid_hw),
            in_specs=[pl.BlockSpec((1, C, hw_tile), lambda n, h: (n, 0, h))],
            out_specs=pl.BlockSpec((1, C, 1), lambda n, h: (n, 0, 0)),
        ),
        compiler_params=pltpu.CompilerParams(
            dimension_semantics=("parallel", "arbitrary"),
            vmem_limit_bytes=vmem_limit),
    )(x3)

    # Tiny SE-MLP on (N, C): negligible work, do it in plain JAX.
    mean = pooled[:, :, 0] * jnp.float32(1.0 / HW)
    hdn = jnp.maximum(mean @ w1t + b1_2d, 0.0)
    gate = jax.nn.sigmoid(hdn @ w2t + b2_2d).astype(x3.dtype)[:, :, None]  # (N, C, 1)

    # Pass 2: spatially tiled gated multiply.
    out3 = pl.pallas_call(
        functools.partial(ca_gate_mul_kernel, hw_chunk=hw_chunk,
                          n_chunks=n_chunks, unroll=unroll),
        out_shape=jax.ShapeDtypeStruct((N, C, HW), x3.dtype),
        grid_spec=pltpu.PrefetchScalarGridSpec(
            num_scalar_prefetch=0,
            grid=(N, grid_hw),
            in_specs=[pl.BlockSpec((1, C, hw_tile), lambda n, h: (n, 0, h)),
                      pl.BlockSpec((1, C, 1), lambda n, h: (n, 0, 0))],
            out_specs=pl.BlockSpec((1, C, hw_tile), lambda n, h: (n, 0, h)),
        ),
        compiler_params=pltpu.CompilerParams(
            dimension_semantics=("parallel", "parallel"),
            vmem_limit_bytes=vmem_limit),
    )(x3, gate)
    return out3


# --------------------------------------------------------------------------
# Public wrapper.
# --------------------------------------------------------------------------
def ca_layer_label(x, w1, b1, w2, b2, *, donate_input=False, force_split=False):
    """x: (N, C, H, W); w1: (Cr, C); b1: (Cr,); w2: (C, Cr); b2: (C,)."""
    N, C, H, W = x.shape
    Cr = w1.shape[0]
    HW = H * W

    # Layout plumbing: lane-dense spatial axis; undone on the output.
    # TODO(synk): for small non-128-multiple H*W (7x7 / 14x14 maps) an
    # (N, HW, C) layout with C lane-dense would keep the output store unmasked.
    x3 = x.reshape(N, C, HW)
    w1t = w1.T                      # (C, Cr)
    w2t = w2.T                      # (Cr, C)
    b1_2d = b1.reshape(1, Cr)
    b2_2d = b2.reshape(1, C)

    vmem_block_budget, vmem_limit = _vmem_plan()
    per_block_budget = vmem_block_budget // 4      # in + out, double-buffered

    itemsize = x.dtype.itemsize
    bytes_per_sample = C * HW * itemsize

    # Spatially tiled path when a single sample would blow the per-block budget
    # (v7x's 64 MiB VMEM halves that threshold) or for single-sample inference
    # with a large feature map (keeps both v7x cores busy / DMA overlapped).
    use_split = (force_split
                 or bytes_per_sample > per_block_budget
                 or (N == 1 and bytes_per_sample > 4 * 1024 * 1024))
    if use_split:
        out3 = _ca_layer_split(x3, w1t, b1_2d, w2t, b2_2d,
                               per_block_budget, vmem_limit)
        return out3.reshape(N, C, H, W)

    # Fused fast path: batch-chunked 1-D grid.  Target >= 4 grid steps when N
    # allows (>= 2 per v7x TensorCore; DMA-in/compute/DMA-out overlap on 1-TC
    # chips), falling back to N steps for tiny batches.
    nb_cap = max(1, per_block_budget // max(1, bytes_per_sample))
    target_steps = 4
    nb = max(1, min(N, nb_cap, pl.cdiv(N, target_steps)))
    grid_n = pl.cdiv(N, nb)

    hw_chunk, n_full, tail = _plan_fast_chunks(HW, nb, C)

    kernel = functools.partial(
        ca_layer_kernel,
        hw_chunk=hw_chunk, n_full=n_full, tail=tail,
        inv_hw=1.0 / float(HW), unroll=(n_full <= 8))

    out3 = pl.pallas_call(
        kernel,
        out_shape=jax.ShapeDtypeStruct((N, C, HW), x.dtype),
        grid_spec=pltpu.PrefetchScalarGridSpec(
            num_scalar_prefetch=0,
            grid=(grid_n,),
            in_specs=[
                pl.BlockSpec((nb, C, HW), lambda n: (n, 0, 0)),
                pl.BlockSpec((C, Cr), lambda n: (0, 0)),   # constant index_map:
                pl.BlockSpec((1, Cr), lambda n: (0, 0)),   # weights/biases are
                pl.BlockSpec((Cr, C), lambda n: (0, 0)),   # not re-fetched per step
                pl.BlockSpec((1, C), lambda n: (0, 0)),
            ],
            out_specs=pl.BlockSpec((nb, C, HW), lambda n: (n, 0, 0)),
        ),
        compiler_params=pltpu.CompilerParams(
            dimension_semantics=("parallel",),
            vmem_limit_bytes=vmem_limit,
        ),
        input_output_aliases=({0: 0} if donate_input else {}),
    )(x3, w1t, b1_2d, w2t, b2_2d)

    return out3.reshape(N, C, H, W)


def ca_layer_ref(x, w1, b1, w2, b2):
    """Pure-JAX reference mirroring the PyTorch forward."""
    y = jnp.mean(x, axis=(2, 3))                       # (N, C)
    h = jnp.maximum(y @ w1.T + b1, 0.0)                # (N, Cr)
    s = jax.nn.sigmoid(h @ w2.T + b2)                  # (N, C)
    return x * s[:, :, None, None]


if __name__ == "__main__":
    # Small shapes consistent with the module: channel must be >= reduction.
    N, C, H, W = 2, 32, 16, 16
    reduction = 16
    Cr = C // reduction

    key = jax.random.PRNGKey(0)
    kx, k1, k2, k3, k4 = jax.random.split(key, 5)

    x = jax.random.normal(kx, (N, C, H, W), dtype=jnp.float32)
    # Deterministic synthetic parameters (Conv2d 1x1 weights squeezed to 2D).
    w1 = 0.1 * jax.random.normal(k1, (Cr, C), dtype=jnp.float32)   # conv1 weight
    b1 = 0.1 * jax.random.normal(k2, (Cr,), dtype=jnp.float32)     # conv1 bias
    w2 = 0.1 * jax.random.normal(k3, (C, Cr), dtype=jnp.float32)   # conv2 weight
    b2 = 0.1 * jax.random.normal(k4, (C,), dtype=jnp.float32)      # conv2 bias

    ref = ca_layer_ref(x, w1, b1, w2, b2)

    # Fused fast path.
    out = jax.block_until_ready(ca_layer_label(x, w1, b1, w2, b2))
    assert out.shape == (N, C, H, W)
    assert jnp.allclose(out, ref, atol=1e-5, rtol=1e-5)

    # Also exercise the spatially tiled split path used for oversized samples.
    out_split = jax.block_until_ready(
        ca_layer_label(x, w1, b1, w2, b2, force_split=True))
    assert jnp.allclose(out_split, ref, atol=1e-5, rtol=1e-5)

    print("KERNEL_OK")
</pallas_src>

<mosaic_0001>
module attributes {stable_mosaic.version = 11 : i64} {
  func.func @ca_layer_kernel(%arg0: i32, %arg1: memref<1x32x256xf32, #tpu.memory_space<vmem>>, %arg2: memref<32x2xf32, #tpu.memory_space<vmem>>, %arg3: memref<1x2xf32, #tpu.memory_space<vmem>>, %arg4: memref<2x32xf32, #tpu.memory_space<vmem>>, %arg5: memref<1x32xf32, #tpu.memory_space<vmem>>, %arg6: memref<1x32x256xf32, #tpu.memory_space<vmem>>) attributes {dimension_semantics = [#tpu.dimension_semantics<parallel>], iteration_bounds = array<i64: 2>, scalar_prefetch = 0 : i64, scratch_operands = 0 : i64, tpu.core_type = #tpu.core_type<tc>, window_params = [{transform_indices = @transform_0, window_bounds = array<i64: 1, 32, 256>}, {pipeline_mode = #tpu.pipeline_mode<synchronous>, transform_indices = @transform_1, window_bounds = array<i64: 32, 2>}, {pipeline_mode = #tpu.pipeline_mode<synchronous>, transform_indices = @transform_2, window_bounds = array<i64: 1, 2>}, {pipeline_mode = #tpu.pipeline_mode<synchronous>, transform_indices = @transform_3, window_bounds = array<i64: 2, 32>}, {pipeline_mode = #tpu.pipeline_mode<synchronous>, transform_indices = @transform_4, window_bounds = array<i64: 1, 32>}, {transform_indices = @transform_5, window_bounds = array<i64: 1, 32, 256>}]} {
    %cst = arith.constant 0.000000e+00 : f32
    %0 = vector.broadcast %cst : f32 to vector<1x32xf32>
    %c0_i32 = arith.constant 0 : i32
    %c256_i32 = arith.constant 256 : i32
    %1 = arith.muli %c0_i32, %c256_i32 : i32
    %2 = tpu.assume_multiple %1, 256 : i32
    %c0 = arith.constant 0 : index
    %c0_0 = arith.constant 0 : index
    %3 = arith.index_cast %2 : i32 to index
    %4 = vector.load %arg1[%c0, %c0_0, %3] : memref<1x32x256xf32, #tpu.memory_space<vmem>>, vector<1x32x256xf32>
    %cst_1 = arith.constant dense<0.000000e+00> : vector<1x32xf32>
    %5 = vector.multi_reduction <add>, %4, %cst_1 [2] : vector<1x32x256xf32> to vector<1x32xf32>
    %6 = arith.addf %0, %5 : vector<1x32xf32>
    %c1_i32 = arith.constant 1 : i32
    %cst_2 = arith.constant 3.906250e-03 : f32
    %7 = vector.broadcast %cst_2 : f32 to vector<1x32xf32>
    %8 = arith.mulf %6, %7 : vector<1x32xf32>
    %c0_3 = arith.constant 0 : index
    %c0_4 = arith.constant 0 : index
    %9 = vector.load %arg2[%c0_3, %c0_4] : memref<32x2xf32, #tpu.memory_space<vmem>>, vector<32x2xf32>
    %cst_5 = arith.constant dense<0.000000e+00> : vector<1x2xf32>
    %10 = tpu.matmul %8, %9, %cst_5 {dimension_numbers = #tpu.dot_dimension_numbers<[1], [0], [0], [1], [0, 0, 1, 1], [], []>} : vector<1x32xf32>, vector<32x2xf32>, vector<1x2xf32> -> vector<1x2xf32>
    %c0_6 = arith.constant 0 : index
    %c0_7 = arith.constant 0 : index
    %11 = vector.load %arg3[%c0_6, %c0_7] : memref<1x2xf32, #tpu.memory_space<vmem>>, vector<1x2xf32>
    %12 = arith.addf %10, %11 : vector<1x2xf32>
    %cst_8 = arith.constant 0.000000e+00 : f32
    %13 = vector.broadcast %cst_8 : f32 to vector<1x2xf32>
    %14 = arith.maximumf %12, %13 : vector<1x2xf32>
    %c0_9 = arith.constant 0 : index
    %c0_10 = arith.constant 0 : index
    %15 = vector.load %arg4[%c0_9, %c0_10] : memref<2x32xf32, #tpu.memory_space<vmem>>, vector<2x32xf32>
    %cst_11 = arith.constant dense<0.000000e+00> : vector<1x32xf32>
    %16 = tpu.matmul %14, %15, %cst_11 {dimension_numbers = #tpu.dot_dimension_numbers<[1], [0], [0], [1], [0, 0, 1, 1], [], []>} : vector<1x2xf32>, vector<2x32xf32>, vector<1x32xf32> -> vector<1x32xf32>
    %c0_12 = arith.constant 0 : index
    %c0_13 = arith.constant 0 : index
    %17 = vector.load %arg5[%c0_12, %c0_13] : memref<1x32xf32, #tpu.memory_space<vmem>>, vector<1x32xf32>
    %18 = arith.addf %16, %17 : vector<1x32xf32>
    %19 = arith.negf %18 : vector<1x32xf32>
    %20 = math.exp %19 : vector<1x32xf32>
    %cst_14 = arith.constant 1.000000e+00 : f32
    %21 = vector.broadcast %cst_14 : f32 to vector<1x32xf32>
    %22 = arith.addf %21, %20 : vector<1x32xf32>
    %23 = arith.divf %21, %22 : vector<1x32xf32>
    %24 = vector.shape_cast %23 : vector<1x32xf32> to vector<1x32x1xf32>
    %25 = vector.shape_cast %24 : vector<1x32x1xf32> to vector<1x32x1xf32>
    %26 = vector.broadcast %25 : vector<1x32x1xf32> to vector<1x32x256xf32>
    %c0_i32_15 = arith.constant 0 : i32
    %c256_i32_16 = arith.constant 256 : i32
    %27 = arith.muli %c0_i32_15, %c256_i32_16 : i32
    %28 = tpu.assume_multiple %27, 256 : i32
    %c0_17 = arith.constant 0 : index
    %c0_18 = arith.constant 0 : index
    %29 = arith.index_cast %28 : i32 to index
    %30 = vector.load %arg1[%c0_17, %c0_18, %29] : memref<1x32x256xf32, #tpu.memory_space<vmem>>, vector<1x32x256xf32>
    %31 = arith.mulf %30, %26 : vector<1x32x256xf32>
    %c0_19 = arith.constant 0 : index
    %c0_20 = arith.constant 0 : index
    %32 = arith.index_cast %28 : i32 to index
    %33 = vector.load %arg6[%c0_19, %c0_20, %32] : memref<1x32x256xf32, #tpu.memory_space<vmem>>, vector<1x32x256xf32>
    tpu.vector_store %arg6[%c0_19, %c0_20, %32], %31 {strides = array<i32>} : memref<1x32x256xf32, #tpu.memory_space<vmem>>, vector<1x32x256xf32>,
    %c1_i32_21 = arith.constant 1 : i32
    return
  }
  func.func @transform_0(%arg0: i32) -> (i32, i32, i32) {
    %c0_i32 = arith.constant 0 : i32
    %c0_i32_0 = arith.constant 0 : i32
    %c0_i32_1 = arith.constant 0 : i32
    return %arg0, %c0_i32, %c0_i32_0 : i32, i32, i32
  }
  func.func @transform_1(%arg0: i32) -> (i32, i32) {
    %c0_i32 = arith.constant 0 : i32
    %c0_i32_0 = arith.constant 0 : i32
    %c0_i32_1 = arith.constant 0 : i32
    return %c0_i32, %c0_i32_0 : i32, i32
  }
  func.func @transform_2(%arg0: i32) -> (i32, i32) {
    %c0_i32 = arith.constant 0 : i32
    %c0_i32_0 = arith.constant 0 : i32
    %c0_i32_1 = arith.constant 0 : i32
    return %c0_i32, %c0_i32_0 : i32, i32
  }
  func.func @transform_3(%arg0: i32) -> (i32, i32) {
    %c0_i32 = arith.constant 0 : i32
    %c0_i32_0 = arith.constant 0 : i32
    %c0_i32_1 = arith.constant 0 : i32
    return %c0_i32, %c0_i32_0 : i32, i32
  }
  func.func @transform_4(%arg0: i32) -> (i32, i32) {
    %c0_i32 = arith.constant 0 : i32
    %c0_i32_0 = arith.constant 0 : i32
    %c0_i32_1 = arith.constant 0 : i32
    return %c0_i32, %c0_i32_0 : i32, i32
  }
  func.func @transform_5(%arg0: i32) -> (i32, i32, i32) {
    %c0_i32 = arith.constant 0 : i32
    %c0_i32_0 = arith.constant 0 : i32
    %c0_i32_1 = arith.constant 0 : i32
    return %arg0, %c0_i32, %c0_i32_0 : i32, i32, i32
  }
}

</mosaic_0001>

<bundles_post_ra>
// kernel: tpu_custom_call.1
= control target key start
LH: loop header
LB: loop body
LE: loop exit
PB: predicated region body
PF: predicated region fallthrough
CT: control target
= control target key end

     0   :  { %10 = vsyncpa [#allocation3], 0  ;;  %s1031_s0 = inlined_call_operand.hbm [shape: f32[2,32,256], index: 0, kind: input, shape index: {}]   ;;  %s1032_s1 = inlined_call_operand.vmem [shape: f32[32,2], index: 1, kind: input, shape index: {}]   ;;  %s1033_s2 = inlined_call_operand.vmem [shape: f32[1,2], index: 2, kind: input, shape index: {}]   ;;  %s1034_s3 = inlined_call_operand.vmem [shape: f32[2,32], index: 3, kind: input, shape index: {}]   ;;  %s1035_s4 = inlined_call_operand.vmem [shape: f32[1,32], index: 4, kind: input, shape index: {}]   ;;  %s1036_s5 = inlined_call_operand.hbm [shape: f32[2,32,256], index: 5, kind: output, shape index: {}]  }
   0x1   :  { %12 = vsyncpa [#allocation3 + $0x1], 0 }
   0x2   :  { %13 = vsyncpa [#allocation4], 0 }
   0x3   :  { %15 = vsyncpa [#allocation4 + $0x1], 0  ;;  %s820_s18 = smov 0   ;;  %s822_s19 = smov 0  }
   0x4   :  { %s824_s20 = smov 0   ;;  %s826_s21 = smov 0  }
   0x5 LB: > { %s841_s22 = sadd.s32 4294967295, %s780_s21   ;;  %s589_s23 = sadd.s32 4294967294, %s780_s21   ;;  %s780_s21 = sphi %s826_s21, %s1051_s21   ;;  %s776_s20 = sphi %s824_s20, %s1050_s20   ;;  %s772_s19 = sphi %s822_s19, %s1049_s19   ;;  %s768_s18 = sphi %s820_s18, %s1048_s18  }
   0x6   : > { %s845_s24 = sadd.s32 1, %s780_s21   ;;  %s28_s25 = sadd.s32 1, %s776_s20 }
   0x7   : > { %s25_s26 = ssub.s32 %s780_s21, %s845_s24  ;;  %p35_p0 = scmp.ne.s32.totalorder %s776_s20, %s772_s19 }
   0x8   : > { %p26_p1 = scmp.eq.s32.totalorder %s25_s26, 0  ;;  %p36_p2 = scmp.eq.s32.totalorder %s780_s21, 0 }
   0x9   : > { %p41_p3 = scmp.ne.s32.totalorder %s772_s19, %s768_s18  ;;  %p42_p4 = scmp.eq.s32.totalorder %s841_s22, 0 }
   0xa   : > { %s857_s27 = scalar_select %p26_p1, %s776_s20, %s28_s25  }
   0xb   : > { %p859_p5 = por %p36_p2, %p35_p0  ;;  %p863_p6 = por %p42_p4, %p41_p3 }
   0xc   : > { %p149_p7 = scmp.eq.s32.totalorder %s841_s22, 1  ;;  %p155_p8 = scmp.eq.s32.totalorder %s589_s23, 1 }
   0xd   : > { %s1040_s29 = scalar_select %p863_p6, 1, 0 }
   0xe   : > { %p644_p10 = scmp.lt.s32.totalorder %s780_s21, 2  ;;  %p870_p11 = por %p149_p7, %p35_p0 }
   0xf   : > { %p874_p12 = por %p155_p8, %p41_p3  ;;  %s187_s7 = sand.u32 1, %s776_s20  }
  0x10   : > { %s1041_s30 = scalar_select %p870_p11, 1, 0 }
  0x11   : > { %s1042_s6 = scalar_select %p874_p12, 1, 0 }
  0x12   : > { %s607_s8 = sshll.u32 %s780_s21, 10  ;;  %s592_s9 = sshll.u32 %s187_s7, 6 }
  0x13   : > { %s883_s12 = scalar_lea.hbm %s1031_s0, %s607_s8  ;;  %s191_s13 = scalar_lea.vmem [#allocation2], %s592_s9 }
  0x14   : > { %s198_s14 = sshll.u32 %s191_s13, 4  ;;  %p887_p13 = pnand %p644_p10, %p859_p5  ;;  %s891_s14 = int_to_ptr.vmem [resolvable:$true] %s198_s14 }
  0x15   : > { %s893_s16 = scalar_lea.sflag [#allocation3], %s187_s7  ;;  %s688_s17 = scalar_lea.hbm %s883_s12, 1024 }
  0x16   : > { %p689_p0 = scmp.ne.s32.totalorder %s883_s12, %s688_s17  ;;  %p690_p1 = pneg %p887_p13 }
  0x17   : > { %s693_s26 = scalar_lea.hbm %s1031_s0, 2048  ;;  %p694_p4 = scmp.lt.s32.totalorder %s883_s12, %s1031_s0 }
  0x18   : > { %p691_p2 = pnand %p690_p1, %p689_p0  ;;  %p695_p5 = scmp.lt.s32.totalorder %s693_s26, %s688_s17 }
  0x1a   : > { %p692_p3 = pneg %p691_p2  ;;  %p696_p7 = por %p695_p5, %p694_p4 }
  0x1c   : > { %p697_p8 = pnand %p696_p7, %p692_p3 }
  0x1e   : > { %700 = shalt.err (!%p697_p8)
}
  0x1f   : > { %s701_s7 = scalar_lea.vmem %s891_s14, 1024  ;;  %s782_s9 = smov [#allocation2]  }
  0x20   : > { %p702_p10 = scmp.ne.s32.totalorder %s891_s14, %s701_s7  ;;  %s706_s10 = sshll.u32 %s782_s9, 4  ;;  %s707_s10 = int_to_ptr.vmem [resolvable:$false] %s706_s10 }
  0x21   : > { %s708_s11 = scalar_lea.vmem %s707_s10, 2048  ;;  %p709_p2 = scmp.lt.s32.totalorder %s891_s14, %s707_s10 }
  0x22   : > { %p704_p9 = pnand %p702_p10, %p690_p1  ;;  %p710_p12 = scmp.lt.s32.totalorder %s708_s11, %s701_s7 }
  0x24   : > { %p705_p0 = pneg %p704_p9  ;;  %p711_p11 = por %p710_p12, %p709_p2 }
  0x26   : > { %p712_p6 = pnand %p711_p11, %p705_p0 }
  0x28   : > { %715 = shalt.err (!%p712_p6)
}
  0x29   : > { %s783_s13 = smov 256   ;;  %s784_s17 = smov 16  }
  0x2a   : > { %639 = dma.hbm_to_vmem [thread:$0]  (!%p887_p13), %s883_s12, 1024, %s891_s14, %s893_s16, %s783_s13, %s783_s13, %s784_s17  }
  0x2b   : > { %p595_p9 = scmp.ge.s32.totalorder %s780_s21, 1  ;;  %p206_p1 = scmp.lt.s32.totalorder %s780_s21, 3 }
  0x2d   : > { %p207_p3 = pnand %p595_p9, %p206_p1 }
  0x2e   : > { %s917_s23 = sand.u32 (!%p207_p3), 1, %s772_s19   ;;  %p1044_p6 = scmp.ne.s32.totalorder (!%p207_p3), %s1040_s29, 0 }
  0x2f   : > { %210 = sbr.rel (%p207_p3) target bundleno = 770 (0x302), region = 40  ;;  %s596_s25 = sshll.u32 (!%p207_p3), %s917_s23, 6 }
  0x30   : > { %s213_s26 = scalar_lea.sflag (!%p207_p3), [#allocation3], %s917_s23  ;;  %s216_s28 = scalar_lea.vmem (!%p207_p3), [#allocation2], %s596_s25 }
  0x34   : > { %759 = dma.done.wait (%p1044_p6), %s213_s26, 1024  }
  0x35   : > { %761 = vsyncadd (%p1044_p6), %s213_s26, 4294966272  ;;  %v927_v0 = vld [vmem:[%s216_s28] sm:$0xff]  ;;  %v929_v1 = vld [vmem:[%s216_s28 + $0x8] sm:$0xff]  ;;  %v785_v12 = vmov 0.0   ;;  %vm786_vm0 = vmmov 0   ;;  %v280_v17 = vlaneseq  ;;  %vm291_vm1 = vcmask 130112  }
  0x36   : > { %v931_v2 = vld [vmem:[%s216_s28 + $0x20] sm:$0xff]  ;;  %v251_v3 = vadd.f32 %v929_v1, %v927_v0  ;;  %v935_v4 = vld [vmem:[%s216_s28 + $0x28] sm:$0xff]  ;;  %v937_v5 = vld [vmem:[%s216_s28 + $0x10] sm:$0xff]  ;;  %616 = vmatprep.subr.mxu0 %v785_v12  ;;  %627 = vmatprep.subr.mxu1 %v785_v12  ;;  %vm298_vm2 = vcmask 195712   ;;  %vm305_vm3 = vcmask 261312   ;;  %vm307_vm4 = vcmask 261120  }
  0x37   : > { %v939_v6 = vld [vmem:[%s216_s28 + $0x18] sm:$0xff]  ;;  %v257_v7 = vadd.f32 %v935_v4, %v931_v2  ;;  %v943_v8 = vld [vmem:[%s216_s28 + $0x30] sm:$0xff]  ;;  %v272_v15 = vld [vmem:[%s1032_s1 + $0x8] sm:$0xff]  ;;  %624 = vmatprep.mubr.msk.f32.mxu0 %vm786_vm0, %v785_v12  ;;  %629 = vmatprep.mubr.msk.f32.mxu1 %vm786_vm0, %v785_v12  ;;  %v281_v18 = vand.u32 127, %v280_v17  ;;  %v283_v19 = vshrl.u32 %v280_v17, 7  ;;  %vm387_vm5 = vcmask 1041408  }
  0x38   : > { %v945_v9 = vld [vmem:[%s216_s28 + $0x38] sm:$0xff]  ;;  %252 = vadd.xlane.f32.xlu0 %v251_v3  ;;  %v254_v10 = vadd.f32 %v939_v6, %v937_v5  ;;  %v273_v14 = vld [vmem:[%s1032_s1 + $0x10] sm:$0xff]  ;;  %v271_v16 = vld [vmem:[%s1032_s1] sm:$0xff]  ;;  %vm383_vm6 = vcmask 15360   ;;  %s242_s29 = scalar_lea.vmem [#allocation5], %s596_s25  ;;  %s608_s14 = sshll.u32 %s841_s22, 10 }
  0x39   : > { %258 = vadd.xlane.f32.xlu1 %v257_v7  ;;  %v260_v11 = vadd.f32 %v945_v9, %v943_v8  ;;  %v274_v13 = vld [vmem:[%s1032_s1 + $0x18] sm:$0xff]  ;;  %v286_v20 = vadd.s32 4294967288, %v281_v18  ;;  %v293_v22 = vadd.s32 4294967280, %v281_v18  ;;  %v300_v23 = vadd.s32 4294967272, %v281_v18  ;;  %v381_v42 = vld [vmem:[%s1034_s3] sm:$0x3]  ;;  %s986_s16 = scalar_lea.hbm %s1036_s5, %s608_s14 }
  0x3a   : > { %617 = vmatpush3.msra.mxu0 %v274_v13  ;;  %v284_v25 = vsub.s32 %v281_v18, %v283_v19  ;;  %628 = vmatpush3.msk.msra.mxu1 %vm387_vm5, %v381_v42  ;;  %v275_v43 = vld [vmem:[%s1033_s2] sm:$0x1]  ;;  %v469_v55 = vsub.s32 0, %v283_v19  ;;  %s516_s12 = sshll.u32 %s242_s29, 4  ;;  %s503_s22 = scalar_lea.sflag [#allocation4], %s917_s23  ;;  %s981_s12 = int_to_ptr.vmem [resolvable:$true] %s516_s12 }
  0x3b   : > { %618 = vmatprep.subr.mxu0 %v785_v12  ;;  %v289_v27 = vsub.s32 %v286_v20, %v283_v19  ;;  %v296_v28 = vsub.s32 %v293_v22, %v283_v19  ;;  %v303_v31 = vsub.s32 %v300_v23, %v283_v19  ;;  %v382_v48 = vld [vmem:[%s1035_s4] sm:$0x1]  ;;  %s716_s8 = scalar_lea.vmem %s981_s12, 1024  ;;  %p1045_p12 = scmp.ne.s32.totalorder %s1041_s30, 0 }
  0x3c   : > { %255 = vadd.xlane.f32.xlu0 %v254_v10  ;;  %619 = vmatpush3.msra.mxu0 %v273_v14  ;;  %p717_p11 = scmp.ne.s32.totalorder %s981_s12, %s716_s8  ;;  %s787_s7 = smov [#allocation5]  }
  0x3d   : > { %261 = vadd.xlane.f32.xlu1 %v260_v11  ;;  %620 = vmatprep.subr.mxu0 %v785_v12  ;;  %s720_s9 = sshll.u32 %s787_s7, 4  ;;  %s721_s9 = int_to_ptr.vmem [resolvable:$false] %s720_s9 }
  0x3e   : > { %621 = vmatpush3.msra.mxu0 %v272_v15  ;;  %p718_p13 = pnand %p717_p11, %p1045_p12  ;;  %s722_s10 = scalar_lea.vmem %s721_s9, 2048 }
  0x3f   : > { %622 = vmatprep.subr.mxu0 %v785_v12  ;;  %p723_p5 = scmp.lt.s32.totalorder %s981_s12, %s721_s9  ;;  %p724_p7 = scmp.lt.s32.totalorder %s722_s10, %s716_s8 }
  0x40   : > { %623 = vmatpush3.msra.mxu0 %v271_v16  ;;  %p719_p4 = pneg %p718_p13 }
  0x41   : > { %p725_p8 = por %p724_p7, %p723_p5 }
  0x43   : > { %p726_p10 = pnand %p725_p8, %p719_p4 }
  0xc1   : > { %v253_v21 = vpop.xlane.xlu0 %252 }
  0xc2   : > { %v259_v24 = vpop.xlane.xlu1 %258  ;;  %v267_v26 = vmul.f32 0.00390625, %v253_v21 }
  0xc3   : > { %v269_v29 = vmul.f32 0.00390625, %v259_v24 }
  0xc4   : > { %v285_v35 = vrot.slane %v267_v26, %v284_v25 }
  0xc5   : > { %v256_v30 = vpop.xlane.xlu0 %255  ;;  %v297_v37 = vrot.slane %v269_v29, %v296_v28 }
  0xc6   : > { %v268_v32 = vmul.f32 0.00390625, %v256_v30  ;;  %v262_v33 = vpop.xlane.xlu1 %261 }
  0xc7   : > { %v270_v34 = vmul.f32 0.00390625, %v262_v33 }
  0xc8   : > { %v290_v36 = vrot.slane %v268_v32, %v289_v27 }
  0xc9   : > { %v304_v38 = vrot.slane %v270_v34, %v303_v31 }
  0xca   : > { %v292_v39 = vsel %vm291_vm1, %v290_v36, %v285_v35 }
  0xcb   : > { %v299_v40 = vsel %vm298_vm2, %v297_v37, %v292_v39 }
  0xcc   : > { %v306_v41 = vsel %vm305_vm3, %v304_v38, %v299_v40 }
  0xcd   : > { %625 = vmatmul.mubr.msk.f32.vlgmr.msra.gmra.mxu0 %vm307_vm4, %v306_v41 }
 0x18d   : > { %v376_v44 = vpop.f32.mrf.mxu0 }
 0x18e   : > { %v377_v45 = vadd.f32 %v376_v44, %v275_v43 }
 0x18f   : > { %v626_v46 = vpop.f32.mrf.mxu0 }
 0x190   : > { %v380_v47 = vmax.f32 %v377_v45, 0.0 }
 0x192   : > { %630 = vmatmul.mubr.msk.f32.vlgmr.msra.gmra.mxu1 %vm383_vm6, %v380_v47 }
 0x252   : > { %v457_v49 = vpop.f32.mrf.mxu1 }
 0x253   : > { %v458_v50 = vadd.f32 %v457_v49, %v382_v48 }
 0x254   : > { %v631_v51 = vpop.f32.mrf.mxu1 }
 0x255   : > { %v601_v52 = vmul.f32 -1.442695, %v458_v50 }
 0x257   : > { %684 = vpow2.f32 %v601_v52 }
 0x264   : > { %v685_v53 = vpop.eup %684 }
 0x265   : > { %v464_v54 = vadd.f32 1.0, %v685_v53 }
 0x267   : > { %686 = vrcp.f32 %v464_v54 }
 0x274   : > { %v687_v56 = vpop.eup %686 }
 0x275   : > { %v470_v57 = vrot.slane %v687_v56, %v469_v55 }
 0x277   : > { %476 = vbcast.lane.b32.xlu1 %v470_v57, 264  ;;  %472 = vbcast.lane.b32.xlu0 %v470_v57, 256 }
 0x27b   : > { %480 = vbcast.lane.b32.xlu1 %v470_v57, 272 }
 0x27f   : > { %484 = vbcast.lane.b32.xlu1 %v470_v57, 280 }
 0x2e9   : > { %v477_v58 = vpop.permute.xlu1 %476  ;;  %v473_v59 = vpop.permute.xlu0 %472 }
 0x2ea   : > { %v488_v60 = vmul.f32 %v477_v58, %v937_v5  ;;  %v489_v61 = vmul.f32 %v477_v58, %v939_v6  ;;  %v486_v62 = vmul.f32 %v473_v59, %v927_v0  ;;  %v487_v63 = vmul.f32 %v473_v59, %v929_v1 }
 0x2ec   : > { %496 = vst [vmem:[%s242_s29 + $0x10] sm:$0xff] %v488_v60  ;;  %497 = vst [vmem:[%s242_s29 + $0x18] sm:$0xff] %v489_v61 }
 0x2ed   : > { %494 = vst [vmem:[%s242_s29] sm:$0xff] %v486_v62  ;;  %495 = vst [vmem:[%s242_s29 + $0x8] sm:$0xff] %v487_v63  ;;  %v481_v3 = vpop.permute.xlu1 %480 }
 0x2ee   : > { %v490_v7 = vmul.f32 %v481_v3, %v931_v2  ;;  %v491_v5 = vmul.f32 %v481_v3, %v935_v4 }
 0x2f0   : > { %498 = vst [vmem:[%s242_s29 + $0x20] sm:$0xff] %v490_v7  ;;  %499 = vst [vmem:[%s242_s29 + $0x28] sm:$0xff] %v491_v5 }
 0x2f1   : > { %v485_v0 = vpop.permute.xlu1 %484 }
 0x2f2   : > { %v492_v1 = vmul.f32 %v485_v0, %v943_v8  ;;  %v493_v2 = vmul.f32 %v485_v0, %v945_v9 }
 0x2f4   : > { %500 = vst [vmem:[%s242_s29 + $0x30] sm:$0xff] %v492_v1  ;;  %501 = vst [vmem:[%s242_s29 + $0x38] sm:$0xff] %v493_v2 }
 0x2f5   : > { %729 = shalt.err (!%p726_p10)
}
 0x2f6   : > { %s730_s11 = scalar_lea.hbm %s986_s16, 1024  ;;  %s734_s26 = scalar_lea.hbm %s1036_s5, 2048 }
 0x2f7   : > { %p731_p0 = scmp.ne.s32.totalorder %s986_s16, %s730_s11  ;;  %p735_p1 = scmp.lt.s32.totalorder %s986_s16, %s1036_s5 }
 0x2f8   : > { %p736_p3 = scmp.lt.s32.totalorder %s734_s26, %s730_s11 }
 0x2f9   : > { %p732_p2 = pnand %p731_p0, %p1045_p12 }
 0x2fa   : > { %p737_p6 = por %p736_p3, %p735_p1 }
 0x2fb   : > { %p733_p9 = pneg %p732_p2 }
 0x2fd   : > { %p738_p11 = pnand %p737_p6, %p733_p9 }
 0x2ff   : > { %741 = shalt.err (!%p738_p11)
}
 0x300   : > { %s788_s14 = smov 256   ;;  %s789_s25 = smov 16  }
 0x301   : > { %634 = dma.vmem_to_hbm [thread:$0]  (%p1045_p12), %s981_s12, 1024, %s986_s16, %s503_s22, %s788_s14, %s788_s14, %s789_s25  }
 0x302 PF: > { %s531_s15 = sand.u32 1, %s768_s18   ;;  %p1046_p13 = scmp.ne.s32.totalorder %s1042_s6, 0 }
 0x303   : > { %p1047_p4 = scmp.ge.s32.totalorder %s780_s21, 2  ;;  %s532_s8 = scalar_lea.sflag [#allocation4], %s531_s15 }
 0x305   : > { %p641_p5 = pnand %p1047_p4, %p1046_p13 }
 0x307   : > { %p642_p7 = pneg %p641_p5 }
 0x309   : > { %763 = dma.done.wait (%p642_p7), %s532_s8, 1024  }
 0x30a   : > { %765 = vsyncadd (%p642_p7), %s532_s8, 4294966272  ;;  %p18_p8 = scmp.ge.s32.totalorder %s845_s24, 4   ;;  %s1048_s18 = smov %s772_s19 }
 0x30b   : > { %s1049_s19 = smov %s776_s20  ;;  %s1050_s20 = smov %s857_s27 }
 0x30c   : > { %s1051_s21 = smov %s845_s24  ;;  %20 = sbr.rel (!%p18_p8) target bundleno = 5 (0x5), region = 85 }
 0x311   :  { %537 = vsyncpa [#allocation3], 1 }
 0x312   :  { %539 = vsyncpa [#allocation3 + $0x1], 1 }
 0x313   :  { %540 = vsyncpa [#allocation4], 1 }
 0x314   :  { %542 = vsyncpa [#allocation4 + $0x1], 1 }

</bundles_post_ra>
